<compile_context>
chip_gen: v7x
topology: tpu7x:2x2x1
jax: 0.10.0
libtpu: 0.0.40
codegen_flags: <defaults>
</compile_context>

<pallas_src>
import numpy as np
import jax
import jax.numpy as jnp
from jax import lax
from jax.experimental import pallas as pl
from jax.experimental.pallas import tpu as pltpu

# ------------------------- synthetic ANI-1x-like constants -------------------------
S = 4                       # number of species (H, C, N, O)
NR = 16                     # radial shifts
NA = 4                      # angular radial shifts
NZ = 8                      # angular angle shifts
RCR = 5.2                   # radial cutoff
RCA = 3.5                   # angular cutoff
ETAR = 16.0
ETAA = 8.0
ZETA = 32.0
RADIAL_START = 0.9
RADIAL_STEP = (RCR - RADIAL_START) / NR
SHFR = (RADIAL_START + np.arange(NR) * RADIAL_STEP).astype(np.float32)
SHFA = np.linspace(0.9, RCA, NA + 1)[:-1].astype(np.float32)
SHFZ = (np.linspace(0.0, np.pi, NZ + 1)[:-1] + np.pi / (2 * NZ)).astype(np.float32)

RADIAL_DIM = S * NR                       # 64   (order: shift-major, species-minor)
N_PAIRS = S * (S + 1) // 2                # 10
ANGULAR_DIM = N_PAIRS * NA * NZ           # 320  (order: species-pair, ShfA, ShfZ)
AEV_DIM = RADIAL_DIM + ANGULAR_DIM        # 384 (= 3*128, already lane-aligned)

H1, H2, H3 = 64, 48, 32                   # logical per-species MLP hidden sizes
H1P, H2P, H3P = 128, 128, 128             # padded (lane-aligned) hidden sizes
ENSEMBLE = 2                              # ensemble_size
CELU_ALPHA = 0.1                          # torchani uses CELU(alpha=0.1)

MATMUL_DTYPE = jnp.bfloat16               # matmul operands; accumulation stays f32

# self atomic energies (EnergyShifter), deterministic
SAE = jnp.array([-0.600953, -38.08316, -54.70775, -75.19446], dtype=jnp.float32)


# ================================ Pallas kernel 1 ===================================
# Radial AEV: for atom i, species s, shift r:
#   aev[i, r*S + s] = sum_{j != i, spec_j == s} 0.25 * exp(-EtaR*(d_ij - ShfR_r)^2) * fc(d_ij)
def _radial_aev_kernel(coords_ref, spec_ref, out_ref):
    c = coords_ref[...]                       # (MB, 3, A) f32
    spec = spec_ref[...]                      # (MB, A, 1) int32
    MB, _, A = c.shape

    # direct pairwise differences (VPU; no Gram-matrix cancellation)
    x = c[:, 0, :]
    y = c[:, 1, :]
    z = c[:, 2, :]                            # (MB, A)
    dx = x[:, :, None] - x[:, None, :]
    dy = y[:, :, None] - y[:, None, :]
    dz = z[:, :, None] - z[:, None, :]
    dist = jnp.sqrt(dx * dx + dy * dy + dz * dz)          # (MB, A, A)

    # cosine cutoff, exclude self-interaction
    fc = jnp.where(dist < RCR, 0.5 * jnp.cos(jnp.pi * dist / RCR) + 0.5, 0.0)
    ii = lax.broadcasted_iota(jnp.int32, (A, A), 0)
    jj = lax.broadcasted_iota(jnp.int32, (A, A), 1)
    offdiag = (ii != jj).astype(jnp.float32)               # (A, A)
    w = 0.25 * fc * offdiag[None, :, :]                    # (MB, A, A)

    # all NR Gaussian shells at once (shifts generated from iota; identical to SHFR)
    r_idx = lax.broadcasted_iota(jnp.int32, (1, 1, NR, 1), 2).astype(jnp.float32)
    shfr = RADIAL_START + r_idx * RADIAL_STEP              # (1, 1, NR, 1)
    t = jnp.exp(-ETAR * (dist[:, :, None, :] - shfr) ** 2) * w[:, :, None, :]  # (MB, A, NR, A)
    t2 = t.reshape(MB, A * NR, A)

    # one-hot of neighbor species (padding -1 matches nothing -> excluded)
    sidx = lax.broadcasted_iota(jnp.int32, (MB, A, S), 2)
    onehot = (spec == sidx).astype(jnp.float32)            # (MB, A, S)

    # single batched contraction over neighbor atoms j
    rad = lax.dot_general(t2, onehot, (((2,), (1,)), ((0,), (0,))),
                          preferred_element_type=jnp.float32)  # (MB, A*NR, S)
    out_ref[...] = rad


def radial_aev(coordinates, species, m_blk):
    Mp, A, _ = coordinates.shape
    nb = Mp // m_blk
    coords_t = jnp.transpose(coordinates.astype(jnp.float32), (0, 2, 1))  # (Mp, 3, A)
    spec3 = species.reshape(Mp, A, 1).astype(jnp.int32)
    rad = pl.pallas_call(
        _radial_aev_kernel,
        out_shape=jax.ShapeDtypeStruct((Mp, A * NR, S), jnp.float32),
        grid=(nb,),
        in_specs=[pl.BlockSpec((m_blk, 3, A), lambda i: (i, 0, 0)),
                  pl.BlockSpec((m_blk, A, 1), lambda i: (i, 0, 0))],
        out_specs=pl.BlockSpec((m_blk, A * NR, S), lambda i: (i, 0, 0)),
        compiler_params=pltpu.CompilerParams(dimension_semantics=("parallel",)),
    )(coords_t, spec3)
    # (Mp, A*NR, S) row-major == (Mp, A, NR*S) row-major: free reshape in HBM.
    return rad.reshape(Mp, A, NR * S)


# ----------------------- angular AEV (plain JAX glue) -------------------------------
# TODO(synk): angular triple-interaction AEV term kept in plain JAX glue (O(A^3) geometry);
#             for realistic atom counts this should be fused into a Pallas kernel that
#             reuses the per-molecule distance/cutoff tile from the radial kernel.
def angular_aev_jax(coordinates, species):
    M, A, _ = coordinates.shape
    dt = jnp.float32
    vec = coordinates[:, None, :, :] - coordinates[:, :, None, :]    # (M, Ai, Aj, 3): r_j - r_i
    dist = jnp.sqrt(jnp.sum(vec * vec, axis=-1) + 1e-12)             # (M, A, A)
    fc = jnp.where(dist < RCA, 0.5 * jnp.cos(jnp.pi * dist / RCA) + 0.5, 0.0)
    idx = jnp.arange(A)
    neq = (idx[:, None] != idx[None, :])
    valid = neq[None, :, :] & (species[:, None, :] >= 0)
    fc = jnp.where(valid, fc, 0.0)

    u = vec / jnp.maximum(dist, 1e-6)[..., None]
    cos_t = jnp.einsum('mijd,mikd->mijk', u, u) * 0.95               # torchani clamp trick
    theta = jnp.arccos(jnp.clip(cos_t, -1.0, 1.0))                   # (M, A, A, A)
    r_avg = 0.5 * (dist[:, :, :, None] + dist[:, :, None, :])
    fc2 = fc[:, :, :, None] * fc[:, :, None, :]
    fc2 = jnp.where(neq[None, None, :, :], fc2, 0.0)                 # j != k

    f_z = 2.0 * ((1.0 + jnp.cos(theta[..., None] - SHFZ)) * 0.5) ** ZETA        # (M,A,A,A,NZ)
    f_a_w = fc2[..., None] * jnp.exp(-ETAA * (r_avg[..., None] - SHFA) ** 2)    # (M,A,A,A,NA)

    oh = (species[..., None] == jnp.arange(S)[None, None, :]).astype(dt)        # (M, A, S)
    pieces = []
    for s1 in range(S):
        for s2 in range(s1, S):
            if s1 == s2:
                pm = oh[:, :, s1][:, :, None] * oh[:, :, s2][:, None, :]
            else:
                pm = (oh[:, :, s1][:, :, None] * oh[:, :, s2][:, None, :]
                      + oh[:, :, s2][:, :, None] * oh[:, :, s1][:, None, :])
            # contract j,k without materializing the (M,A,A,A,NA,NZ) tensor
            p = 0.5 * jnp.einsum('mjk,mijka,mijkz->miaz', pm, f_a_w, f_z)       # (M, A, NA, NZ)
            pieces.append(p.reshape(M, A, -1))
    return jnp.concatenate(pieces, axis=-1)                                     # (M, A, ANGULAR_DIM)


# ================================ Pallas kernel 2 ===================================
def _celu(x):
    # clip the exp argument so the unselected branch never overflows
    return jnp.where(x > 0, x, CELU_ALPHA * (jnp.exp(jnp.minimum(x, 0.0) / CELU_ALPHA) - 1.0))


# grid = (molecule blocks,): one invocation runs the whole (ensemble x species) loop on a
# block of M_BLK molecules.  Weights are full-array (constant index_map) -> VMEM resident.
def _ensemble_kernel(aev_ref, spec_ref,
                     w1_ref, b1_ref, w2_ref, b2_ref,
                     w3_ref, b3_ref, w4_ref, b4_ref, out_ref):
    MB, A, D = aev_ref.shape
    N = MB * A
    x = aev_ref[...].reshape(N, D)                       # (N, D) bf16
    spec = spec_ref[...].reshape(N, 1)                   # (N, 1) int32

    # TODO(synk): every atom is run through all S species networks and masked; a
    #             scalar-prefetch species sort would remove the S-fold redundant MLP FLOPs.
    atom_e = jnp.zeros((N, 1), jnp.float32)
    for e in range(ENSEMBLE):                            # static unroll (ENSEMBLE * S = 8)
        for s in range(S):
            h = _celu(jnp.dot(x, w1_ref[e, s],
                              preferred_element_type=jnp.float32) + b1_ref[e, s])
            h = _celu(jnp.dot(h.astype(MATMUL_DTYPE), w2_ref[e, s],
                              preferred_element_type=jnp.float32) + b2_ref[e, s])
            h = _celu(jnp.dot(h.astype(MATMUL_DTYPE), w3_ref[e, s],
                              preferred_element_type=jnp.float32) + b3_ref[e, s])
            y = jnp.dot(h.astype(MATMUL_DTYPE), w4_ref[e, s],
                        preferred_element_type=jnp.float32) + b4_ref[e, s]      # (N, 1)
            mask = (spec == s).astype(jnp.float32)       # padding (-1) matches no species
            atom_e = atom_e + y * mask

    # per-molecule sums via a block-diagonal selection matmul (keeps MXU-friendly layout)
    row = lax.broadcasted_iota(jnp.int32, (MB, N), 0)
    col = lax.broadcasted_iota(jnp.int32, (MB, N), 1)
    seg = ((col // A) == row).astype(jnp.float32)                                # (MB, N)
    mol_e = jnp.dot(seg, atom_e, preferred_element_type=jnp.float32)             # (MB, 1)
    out_ref[...] = (mol_e * (1.0 / ENSEMBLE)).reshape(1, MB, 1)                  # ensemble mean


def pad_params(params):
    """Zero-pad hidden widths to 128 (numerically exact) and cast weights to bf16."""
    w1, b1, w2, b2, w3, b3, w4, b4 = params

    def pad4(a, row_pad, col_pad):
        return jnp.pad(a, ((0, 0), (0, 0), (0, row_pad), (0, col_pad)))

    w1p = pad4(w1, 0, H1P - H1).astype(MATMUL_DTYPE)
    b1p = pad4(b1, 0, H1P - H1)
    w2p = pad4(w2, H1P - H1, H2P - H2).astype(MATMUL_DTYPE)
    b2p = pad4(b2, 0, H2P - H2)
    w3p = pad4(w3, H2P - H2, H3P - H3).astype(MATMUL_DTYPE)
    b3p = pad4(b3, 0, H3P - H3)
    w4p = pad4(w4, H3P - H3, 0).astype(MATMUL_DTYPE)
    b4p = b4
    return w1p, b1p, w2p, b2p, w3p, b3p, w4p, b4p


def ensemble_energies(aev, species, params, m_blk):
    Mp, A, D = aev.shape
    nb = Mp // m_blk
    spec3 = species.reshape(Mp, A, 1).astype(jnp.int32)
    w1p, b1p, w2p, b2p, w3p, b3p, w4p, b4p = pad_params(params)

    amap = lambda i: (i, 0, 0)
    wmap = lambda i: (0, 0, 0, 0)          # same block every step -> DMA'd once, VMEM-resident
    out = pl.pallas_call(
        _ensemble_kernel,
        out_shape=jax.ShapeDtypeStruct((nb, m_blk, 1), jnp.float32),
        grid=(nb,),
        in_specs=[
            pl.BlockSpec((m_blk, A, D), amap),
            pl.BlockSpec((m_blk, A, 1), amap),
            pl.BlockSpec(w1p.shape, wmap), pl.BlockSpec(b1p.shape, wmap),
            pl.BlockSpec(w2p.shape, wmap), pl.BlockSpec(b2p.shape, wmap),
            pl.BlockSpec(w3p.shape, wmap), pl.BlockSpec(b3p.shape, wmap),
            pl.BlockSpec(w4p.shape, wmap), pl.BlockSpec(b4p.shape, wmap),
        ],
        out_specs=pl.BlockSpec((1, m_blk, 1), lambda i: (i, 0, 0)),
        compiler_params=pltpu.CompilerParams(dimension_semantics=("parallel",)),
    )(aev.astype(MATMUL_DTYPE), spec3, w1p, b1p, w2p, b2p, w3p, b3p, w4p, b4p)
    return out.reshape(Mp)


# ------------------------- deterministic synthetic parameters -----------------------
def init_params(key):
    ks = jax.random.split(key, 4)

    def w(k, shape, fan_in):
        return (jax.random.normal(k, shape, jnp.float32) / np.sqrt(fan_in)).astype(jnp.float32)

    w1 = w(ks[0], (ENSEMBLE, S, AEV_DIM, H1), AEV_DIM)
    w2 = w(ks[1], (ENSEMBLE, S, H1, H2), H1)
    w3 = w(ks[2], (ENSEMBLE, S, H2, H3), H2)
    w4 = w(ks[3], (ENSEMBLE, S, H3, 1), H3)
    b1 = jnp.zeros((ENSEMBLE, S, 1, H1), jnp.float32)
    b2 = jnp.zeros((ENSEMBLE, S, 1, H2), jnp.float32)
    b3 = jnp.zeros((ENSEMBLE, S, 1, H3), jnp.float32)
    b4 = jnp.zeros((ENSEMBLE, S, 1, 1), jnp.float32)
    return (w1, b1, w2, b2, w3, b3, w4, b4)


# ---------------------------------- BuiltinNet.forward ------------------------------
def builtin_net_forward(species, coordinates, params, m_blk=64):
    """(species, coordinates) -> (species, energies)
       == AEVComputer -> Ensemble(ANIModel) -> EnergyShifter"""
    M, A = species.shape
    mb = min(m_blk, M)
    pad = (-M) % mb                                   # pad molecules to a multiple of mb
    sp = species.astype(jnp.int32)
    co = coordinates.astype(jnp.float32)
    if pad:
        co = jnp.concatenate([co, jnp.zeros((pad, A, 3), jnp.float32)], axis=0)
        sp = jnp.concatenate([sp, jnp.full((pad, A), -1, jnp.int32)], axis=0)

    radial = radial_aev(co, sp, mb)                   # Pallas kernel
    angular = angular_aev_jax(co, sp)                 # JAX glue (see TODO above)
    aev = jnp.concatenate([radial, angular], axis=-1) # (Mp, A, 384)
    energies = ensemble_energies(aev, sp, params, mb) # Pallas kernel (ensemble mean)

    # EnergyShifter: add per-molecule sum of self atomic energies (glue)
    sae_atom = jnp.where(sp >= 0, SAE[jnp.clip(sp, 0, S - 1)], 0.0)
    energies = (energies + jnp.sum(sae_atom, axis=1))[:M]
    return species, energies


if __name__ == "__main__":
    key = jax.random.PRNGKey(0)
    kc, kp = jax.random.split(key)

    M, A = 2, 8
    coordinates = jax.random.normal(kc, (M, A, 3), dtype=jnp.float32) * 2.0
    species = jnp.array([[0, 1, 2, 3, 0, 1, 0, 0],
                         [3, 2, 1, 0, 1, 1, -1, -1]], dtype=jnp.int32)  # -1 = padding

    params = init_params(kp)
    spec_out, energies = builtin_net_forward(species, coordinates, params)
    energies = jax.block_until_ready(energies)

    assert energies.shape == (M,)
    assert bool(jnp.all(jnp.isfinite(energies)))
    print("KERNEL_OK")
</pallas_src>

<mosaic_0001>
module attributes {stable_mosaic.version = 11 : i64} {
  func.func @_radial_aev_kernel(%arg0: i32, %arg1: memref<2x3x8xf32, #tpu.memory_space<vmem>>, %arg2: memref<2x8x1xi32, #tpu.memory_space<vmem>>, %arg3: memref<2x128x4xf32, #tpu.memory_space<vmem>>) attributes {dimension_semantics = [#tpu.dimension_semantics<parallel>], iteration_bounds = array<i64: 1>, scalar_prefetch = 0 : i64, scratch_operands = 0 : i64, tpu.core_type = #tpu.core_type<tc>, window_params = [{transform_indices = @transform_0, window_bounds = array<i64: 2, 3, 8>}, {transform_indices = @transform_1, window_bounds = array<i64: 2, 8, 1>}, {transform_indices = @transform_2, window_bounds = array<i64: 2, 128, 4>}]} {
    %c0 = arith.constant 0 : index
    %c0_0 = arith.constant 0 : index
    %c0_1 = arith.constant 0 : index
    %0 = vector.load %arg1[%c0, %c0_0, %c0_1] : memref<2x3x8xf32, #tpu.memory_space<vmem>>, vector<2x3x8xf32>
    %c0_2 = arith.constant 0 : index
    %c0_3 = arith.constant 0 : index
    %c0_4 = arith.constant 0 : index
    %1 = vector.load %arg2[%c0_2, %c0_3, %c0_4] : memref<2x8x1xi32, #tpu.memory_space<vmem>>, vector<2x8x1xi32>
    %2 = vector.extract_strided_slice %0 {offsets = [0, 0, 0], sizes = [2, 1, 8], strides = [1, 1, 1]} : vector<2x3x8xf32> to vector<2x1x8xf32>
    %3 = vector.shape_cast %2 : vector<2x1x8xf32> to vector<2x8xf32>
    %4 = vector.extract_strided_slice %0 {offsets = [0, 1, 0], sizes = [2, 1, 8], strides = [1, 1, 1]} : vector<2x3x8xf32> to vector<2x1x8xf32>
    %5 = vector.shape_cast %4 : vector<2x1x8xf32> to vector<2x8xf32>
    %6 = vector.extract_strided_slice %0 {offsets = [0, 2, 0], sizes = [2, 1, 8], strides = [1, 1, 1]} : vector<2x3x8xf32> to vector<2x1x8xf32>
    %7 = vector.shape_cast %6 : vector<2x1x8xf32> to vector<2x8xf32>
    %8 = vector.shape_cast %3 : vector<2x8xf32> to vector<2x8x1xf32>
    %9 = vector.shape_cast %3 : vector<2x8xf32> to vector<2x1x8xf32>
    %10 = vector.broadcast %8 : vector<2x8x1xf32> to vector<2x8x8xf32>
    %11 = vector.broadcast %9 : vector<2x1x8xf32> to vector<2x8x8xf32>
    %12 = arith.subf %10, %11 : vector<2x8x8xf32>
    %13 = vector.shape_cast %5 : vector<2x8xf32> to vector<2x8x1xf32>
    %14 = vector.shape_cast %5 : vector<2x8xf32> to vector<2x1x8xf32>
    %15 = vector.broadcast %13 : vector<2x8x1xf32> to vector<2x8x8xf32>
    %16 = vector.broadcast %14 : vector<2x1x8xf32> to vector<2x8x8xf32>
    %17 = arith.subf %15, %16 : vector<2x8x8xf32>
    %18 = vector.shape_cast %7 : vector<2x8xf32> to vector<2x8x1xf32>
    %19 = vector.shape_cast %7 : vector<2x8xf32> to vector<2x1x8xf32>
    %20 = vector.broadcast %18 : vector<2x8x1xf32> to vector<2x8x8xf32>
    %21 = vector.broadcast %19 : vector<2x1x8xf32> to vector<2x8x8xf32>
    %22 = arith.subf %20, %21 : vector<2x8x8xf32>
    %23 = arith.mulf %12, %12 : vector<2x8x8xf32>
    %24 = arith.mulf %17, %17 : vector<2x8x8xf32>
    %25 = arith.addf %23, %24 : vector<2x8x8xf32>
    %26 = arith.mulf %22, %22 : vector<2x8x8xf32>
    %27 = arith.addf %25, %26 : vector<2x8x8xf32>
    %28 = math.sqrt %27 : vector<2x8x8xf32>
    %cst = arith.constant 5.200000e+00 : f32
    %29 = vector.broadcast %cst : f32 to vector<2x8x8xf32>
    %30 = arith.cmpf olt, %28, %29 : vector<2x8x8xf32>
    %cst_5 = arith.constant 3.14159274 : f32
    %31 = vector.broadcast %cst_5 : f32 to vector<2x8x8xf32>
    %32 = arith.mulf %31, %28 : vector<2x8x8xf32>
    %cst_6 = arith.constant 5.200000e+00 : f32
    %33 = vector.broadcast %cst_6 : f32 to vector<2x8x8xf32>
    %34 = arith.divf %32, %33 : vector<2x8x8xf32>
    %35 = math.cos %34 : vector<2x8x8xf32>
    %cst_7 = arith.constant 5.000000e-01 : f32
    %36 = vector.broadcast %cst_7 : f32 to vector<2x8x8xf32>
    %37 = arith.mulf %36, %35 : vector<2x8x8xf32>
    %cst_8 = arith.constant 5.000000e-01 : f32
    %38 = vector.broadcast %cst_8 : f32 to vector<2x8x8xf32>
    %39 = arith.addf %37, %38 : vector<2x8x8xf32>
    %cst_9 = arith.constant 0.000000e+00 : f32
    %40 = vector.broadcast %cst_9 : f32 to vector<2x8x8xf32>
    %41 = arith.select %30, %39, %40 : vector<2x8x8xi1>, vector<2x8x8xf32>
    %42 = tpu.iota {dimensions = array<i32: 0>} : vector<8x8xi32>
    %43 = tpu.iota {dimensions = array<i32: 1>} : vector<8x8xi32>
    %44 = arith.cmpi ne, %42, %43 : vector<8x8xi32>
    %45 = arith.extui %44 : vector<8x8xi1> to vector<8x8xi32>
    %46 = arith.sitofp %45 : vector<8x8xi32> to vector<8x8xf32>
    %cst_10 = arith.constant 2.500000e-01 : f32
    %47 = vector.broadcast %cst_10 : f32 to vector<2x8x8xf32>
    %48 = arith.mulf %47, %41 : vector<2x8x8xf32>
    %49 = vector.shape_cast %46 : vector<8x8xf32> to vector<1x8x8xf32>
    %50 = vector.broadcast %49 : vector<1x8x8xf32> to vector<2x8x8xf32>
    %51 = arith.mulf %48, %50 : vector<2x8x8xf32>
    %52 = tpu.iota {dimensions = array<i32: 2>} : vector<1x1x16x1xi32>
    %53 = arith.sitofp %52 : vector<1x1x16x1xi32> to vector<1x1x16x1xf32>
    %cst_11 = arith.constant 2.687500e-01 : f32
    %54 = vector.broadcast %cst_11 : f32 to vector<1x1x16x1xf32>
    %55 = arith.mulf %53, %54 : vector<1x1x16x1xf32>
    %cst_12 = arith.constant 0.899999976 : f32
    %56 = vector.broadcast %cst_12 : f32 to vector<1x1x16x1xf32>
    %57 = arith.addf %56, %55 : vector<1x1x16x1xf32>
    %58 = vector.shape_cast %28 : vector<2x8x8xf32> to vector<2x8x1x8xf32>
    %59 = vector.broadcast %58 : vector<2x8x1x8xf32> to vector<2x8x16x8xf32>
    %60 = vector.broadcast %57 : vector<1x1x16x1xf32> to vector<2x8x16x8xf32>
    %61 = arith.subf %59, %60 : vector<2x8x16x8xf32>
    %62 = arith.mulf %61, %61 : vector<2x8x16x8xf32>
    %cst_13 = arith.constant -1.600000e+01 : f32
    %63 = vector.broadcast %cst_13 : f32 to vector<2x8x16x8xf32>
    %64 = arith.mulf %63, %62 : vector<2x8x16x8xf32>
    %65 = math.exp %64 : vector<2x8x16x8xf32>
    %66 = vector.shape_cast %51 : vector<2x8x8xf32> to vector<2x8x1x8xf32>
    %67 = vector.broadcast %66 : vector<2x8x1x8xf32> to vector<2x8x16x8xf32>
    %68 = arith.mulf %65, %67 : vector<2x8x16x8xf32>
    %69 = vector.shape_cast %68 : vector<2x8x16x8xf32> to vector<2x128x8xf32>
    %70 = tpu.iota {dimensions = array<i32: 2>} : vector<2x8x4xi32>
    %71 = vector.broadcast %1 : vector<2x8x1xi32> to vector<2x8x4xi32>
    %72 = arith.cmpi eq, %71, %70 : vector<2x8x4xi32>
    %73 = arith.extui %72 : vector<2x8x4xi1> to vector<2x8x4xi32>
    %74 = arith.sitofp %73 : vector<2x8x4xi32> to vector<2x8x4xf32>
    %cst_14 = arith.constant dense<0.000000e+00> : vector<2x128x4xf32>
    %75 = tpu.matmul %69, %74, %cst_14 {dimension_numbers = #tpu.dot_dimension_numbers<[2], [1], [1], [2], [0, 0, 0, 1, 1, 2], [0], [0]>} : vector<2x128x8xf32>, vector<2x8x4xf32>, vector<2x128x4xf32> -> vector<2x128x4xf32>
    %c0_15 = arith.constant 0 : index
    %c0_16 = arith.constant 0 : index
    %c0_17 = arith.constant 0 : index
    %76 = vector.load %arg3[%c0_15, %c0_16, %c0_17] : memref<2x128x4xf32, #tpu.memory_space<vmem>>, vector<2x128x4xf32>
    tpu.vector_store %arg3[%c0_15, %c0_16, %c0_17], %75 {strides = array<i32>} : memref<2x128x4xf32, #tpu.memory_space<vmem>>, vector<2x128x4xf32>,
    return
  }
  func.func @transform_0(%arg0: i32) -> (i32, i32, i32) {
    %c0_i32 = arith.constant 0 : i32
    %c0_i32_0 = arith.constant 0 : i32
    %c0_i32_1 = arith.constant 0 : i32
    return %arg0, %c0_i32, %c0_i32_0 : i32, i32, i32
  }
  func.func @transform_1(%arg0: i32) -> (i32, i32, i32) {
    %c0_i32 = arith.constant 0 : i32
    %c0_i32_0 = arith.constant 0 : i32
    %c0_i32_1 = arith.constant 0 : i32
    return %arg0, %c0_i32, %c0_i32_0 : i32, i32, i32
  }
  func.func @transform_2(%arg0: i32) -> (i32, i32, i32) {
    %c0_i32 = arith.constant 0 : i32
    %c0_i32_0 = arith.constant 0 : i32
    %c0_i32_1 = arith.constant 0 : i32
    return %arg0, %c0_i32, %c0_i32_0 : i32, i32, i32
  }
}

</mosaic_0001>

<bundles_post_ra>
// kernel: tpu_custom_call.1
= control target key start
LH: loop header
LB: loop body
LE: loop exit
PB: predicated region body
PF: predicated region fallthrough
CT: control target
= control target key end

     0   :  { %v15_v0 = vlaneseq  ;;  %v1539_v1 = vmov 0   ;;  %v1540_v38 = vmov 1966171168   ;;  %v1541_v53 = vmov 1.0   ;;  %s2180_s0 = inlined_call_operand.vmem [shape: f32[2,3,8], index: 0, kind: input, shape index: {}]   ;;  %s2181_s1 = inlined_call_operand.vmem [shape: s32[2,8,1], index: 1, kind: input, shape index: {}]   ;;  %s2182_s2 = inlined_call_operand.vmem [shape: f32[2,128,4], index: 2, kind: output, shape index: {}]  }
   0x1   :  { %1462 = vset.pattern.permute.xlu1 %v1539_v1  ;;  %1461 = vset.pattern.permute.xlu0 %v1539_v1  ;;  %v11_v3 = vld [vmem:[%s2180_s0] sm:$0x7]  ;;  %v12_v6 = vld [vmem:[%s2180_s0 + $0x4] sm:$0x7]  ;;  %v14_v14 = vld [vmem:[%s2181_s1 + $0x8] sm:$0xff]  ;;  %v328_v39 = vunpack.c.l.s4 %v1540_v38 }
   0x2   :  { %v1564_v2 = vshrl.u32 %v15_v0, 7  ;;  %v13_v15 = vld [vmem:[%s2181_s1] sm:$0xff]  ;;  %v1586_v42 = vand.u32 127, %v15_v0 }
   0x3   :  { %v329_v41 = vunpack.c.0.s8 %v328_v39 }
   0x4   :  { %v1570_v4 = vsub.s32 0, %v1564_v2  ;;  %v33_v5 = vsub.s32 1, %v1564_v2  ;;  %v49_v11 = vsub.s32 2, %v1564_v2  ;;  %v317_v40 = vadd.s32 8, %v1564_v2 }
   0x5   :  { %v318_v44 = vcvt.s32.f32 %v1564_v2  ;;  %v1592_v50 = vsub.s32 %v329_v41, %v1564_v2  ;;  %vm310_vm6 = vcmp.ne.s32.totalorder %v1564_v2, %v1586_v42 }
   0x6   :  { %v34_v7 = vrot.slane %v11_v3, %v33_v5  ;;  %v18_v8 = vrot.slane %v11_v3, %v1570_v4  ;;  %v41_v9 = vrot.slane %v12_v6, %v33_v5  ;;  %v25_v10 = vrot.slane %v12_v6, %v1570_v4 }
   0x7   :  { %v57_v12 = vrot.slane %v12_v6, %v49_v11  ;;  %v50_v13 = vrot.slane %v11_v3, %v49_v11  ;;  %v319_v48 = vcvt.s32.f32 %v317_v40  ;;  %v320_v56 = vmul.f32 0.26875, %v318_v44 }
   0x8   :  { %36 = vbcast.lane.b32.xlu1 %v34_v7, 256  ;;  %20 = vbcast.lane.b32.xlu0 %v18_v8, 256 }
   0x9   :  { %v321_v59 = vmul.f32 0.26875, %v319_v48 }
   0xb   :  { %v1625_v11 = vadd.f32 0.9, %v321_v59 }
   0xc   :  { %43 = vbcast.lane.b32.xlu1 %v41_v9, 256  ;;  %27 = vbcast.lane.b32.xlu0 %v25_v10, 256 }
  0x10   :  { %59 = vbcast.lane.b32.xlu1 %v57_v12, 256  ;;  %52 = vbcast.lane.b32.xlu0 %v50_v13, 256 }
  0x14   :  { %880 = vperm.xlu1 %1462, %v14_v14   ;;  %877 = vperm.xlu0 %1461, %v13_v15  }
  0x7a   :  { %v37_v16 = vpop.permute.xlu1 %36  ;;  %v21_v17 = vpop.permute.xlu0 %20 }
  0x7b   :  { %v45_v18 = vsub.f32 %v37_v16, %v34_v7  ;;  %v29_v19 = vsub.f32 %v21_v17, %v18_v8  ;;  %v1615_v7 = vadd.f32 0.9, %v320_v56 }
  0x7d   :  { %v65_v24 = vmul.f32 %v45_v18, %v45_v18  ;;  %v63_v25 = vmul.f32 %v29_v19, %v29_v19 }
  0x7e   :  { %v44_v20 = vpop.permute.xlu1 %43  ;;  %v28_v21 = vpop.permute.xlu0 %27 }
  0x7f   :  { %v46_v22 = vsub.f32 %v44_v20, %v41_v9  ;;  %v30_v23 = vsub.f32 %v28_v21, %v25_v10  ;;  %v67_v32 = vadd.f32 %v65_v24, %v63_v25 }
  0x81   :  { %v66_v26 = vmul.f32 %v46_v22, %v46_v22  ;;  %v64_v27 = vmul.f32 %v30_v23, %v30_v23 }
  0x82   :  { %v60_v28 = vpop.permute.xlu1 %59  ;;  %v53_v29 = vpop.permute.xlu0 %52 }
  0x83   :  { %v62_v30 = vsub.f32 %v60_v28, %v57_v12  ;;  %v61_v31 = vsub.f32 %v53_v29, %v50_v13  ;;  %v68_v33 = vadd.f32 %v66_v26, %v64_v27 }
  0x85   :  { %v70_v34 = vmul.f32 %v62_v30, %v62_v30  ;;  %v69_v35 = vmul.f32 %v61_v31, %v61_v31 }
  0x87   :  { %v72_v36 = vadd.f32 %v70_v34, %v68_v33  ;;  %v71_v37 = vadd.f32 %v69_v35, %v67_v32  ;;  %v1542_v34 = vmov 0.0  }
  0x88   :  { %v1651_v35 = vsel %vm310_vm6, 1.0, %v1542_v34 }
  0x89   :  { %1463 = vrsqrt.f32 %v72_v36  ;;  %vm82_vm2 = vcmp.eq.f32.partialorder %v72_v36, inf  ;;  %v85_v51 = vand.u32 2147483648, %v72_v36  ;;  %vm75_vm3 = vcmp.eq.f32.partialorder %v71_v37, inf }
  0x8a   :  { %1465 = vrsqrt.f32 %v71_v37  ;;  %v78_v54 = vand.u32 2147483648, %v71_v37  ;;  %vm84_vm4 = vcmp.eq.f32.partialorder %v72_v36, 0.0  ;;  %vm77_vm5 = vcmp.eq.f32.partialorder %v71_v37, 0.0 }
  0x93   :  { %v1464_v43 = vpop.eup %1463  ;;  %v881_v45 = vpop.permute.xlu1 %880 }
  0x94   :  { %v878_v46 = vpop.permute.xlu0 %877  ;;  %v1466_v47 = vpop.eup %1465  ;;  %v81_v49 = vmul.f32 %v1464_v43, %v72_v36  ;;  %vm883_vm1 = vcmp.eq.s32.totalorder %v881_v45, %v1586_v42 }
  0x95   :  { %vm882_vm0 = vcmp.eq.s32.totalorder %v878_v46, %v1586_v42  ;;  %v74_v52 = vmul.f32 %v1466_v47, %v71_v37  ;;  %1417 = vmatprep.subr.msk.mxu1 %vm883_vm1, %v1541_v53 }
  0x96   :  { %1391 = vmatprep.subr.msk.mxu0 %vm882_vm0, %v1541_v53  ;;  %1418 = vmatpush3.msk.msra.mxu1 %vm883_vm1, %v1541_v53  ;;  %v83_v55 = vsel %vm82_vm2, %v72_v36, %v81_v49 }
  0x97   :  { %1392 = vmatpush3.msk.msra.mxu0 %vm882_vm0, %v1541_v53  ;;  %v76_v57 = vsel %vm75_vm3, %v71_v37, %v74_v52  ;;  %v1594_v58 = vsel %vm84_vm4, %v85_v51, %v83_v55 }
  0x98   :  { %v1596_v60 = vsel %vm77_vm5, %v78_v54, %v76_v57  ;;  %v90_v61 = vmul.f32 3.1415927, %v1594_v58  ;;  %v375_v62 = vcombine.high %v1594_v58, %v1594_v58  ;;  %v1610_v5 = vrot.slane %v1594_v58, %v1592_v50 }
  0x99   :  { %v89_v63 = vmul.f32 3.1415927, %v1596_v60  ;;  %v326_v0 = vcombine.high %v1596_v60, %v1596_v60  ;;  %v333_v1 = vrot.slane %v1596_v60, %v1592_v50  ;;  %v1543_v57 = vmov 683565275  }
  0x9a   :  { %v1606_v3 = vmul.f32 0.1923077, %v90_v61  ;;  %v1613_v6 = vrot.slane %v375_v62, %v1592_v50  ;;  %v1643_v29 = vrot.slane %v1610_v5, %v1592_v50  ;;  %v390_v42 = vcombine.high %v1610_v5, %v1610_v5 }
  0x9b   :  { %v1617_v8 = vmul.f32 0.1923077, %v89_v63  ;;  %v1620_v9 = vrot.slane %v326_v0, %v1592_v50  ;;  %v1623_v10 = vrot.slane %v333_v1, %v1592_v50  ;;  %v341_v19 = vcombine.high %v333_v1, %v333_v1 }
  0x9c   :  { %v197_v12 = vand.u32 2147483647, %v1606_v3  ;;  %v200_v13 = vand.u32 2139095040, %v1606_v3  ;;  %v459_v39 = vrot.slane %v1643_v29, %v1570_v4  ;;  %v1544_v61 = vmov 2475754826  }
  0x9d   :  { %v94_v14 = vand.u32 2147483647, %v1617_v8  ;;  %v97_v15 = vand.u32 2139095040, %v1617_v8  ;;  %v427_v16 = vrot.slane %v1623_v10, %v1570_v4  ;;  %v1646_v33 = vrot.slane %v341_v19, %v1592_v50 }
  0x9e   :  { %v201_v20 = vshrl.u32 %v200_v13, 23  ;;  %v204_v23 = vand.u32 8388607, %v197_v12  ;;  %v371_v37 = vcombine.high %v1623_v10, %v1623_v10  ;;  %v1674_v49 = vsub.f32 %v459_v39, %v1615_v7 }
  0x9f   :  { %v98_v17 = vshrl.u32 %v97_v15, 23  ;;  %v101_v18 = vand.u32 8388607, %v94_v14  ;;  %v504_v21 = vsub.f32 %v427_v16, %v1615_v7  ;;  %v505_v22 = vsub.f32 %v427_v16, %v1625_v11 }
  0xa0   :  { %v1316_v25 = vadd.s32 4294967169, %v201_v20  ;;  %v205_v31 = vor.u32 8388608, %v204_v23  ;;  %v1661_v40 = vrot.slane %v1646_v33, %v1570_v4  ;;  %v1677_v51 = vsub.f32 %v459_v39, %v1625_v11 }
  0xa1   :  { %v1312_v24 = vadd.s32 4294967169, %v98_v17  ;;  %v102_v26 = vor.u32 8388608, %v101_v18  ;;  %v536_v27 = vmul.f32 %v504_v21, %v504_v21  ;;  %v537_v28 = vmul.f32 %v505_v22, %v505_v22 }
  0xa2   :  { %v207_v32 = vadd.s32 1, %v1316_v25  ;;  %v1671_v47 = vshll.u32 %v205_v31, 8  ;;  %v1681_v52 = vsub.f32 %v1661_v40, %v1615_v7  ;;  %v1545_v63 = vmov 2131351028  }
  0xa3   :  { %v104_v30 = vadd.s32 1, %v1312_v24  ;;  %v568_v38 = vmul.f32 -16.0, %v536_v27  ;;  %v1667_v45 = vshll.u32 %v102_v26, 8  ;;  %v1669_v46 = vmul.f32 -16.0, %v537_v28 }
  0xa4   :  { %vm208_vm8 = vcmp.gt.s32.totalorder %v207_v32, 0  ;;  %v1546_v1 = vmov 2102212464   ;;  %v1547_v18 = vmov 920167782   ;;  %vm96_vm2 = vcmp.lt.s32.totalorder %v1617_v8, 0 }
  0xa5   :  { %vm105_vm7 = vcmp.gt.s32.totalorder %v104_v30, 0  ;;  %v209_v2 = vsel %vm208_vm8, %v207_v32, 0  ;;  %v1683_v54 = vmul.f32 1.442695, %v568_v38  ;;  %v1548_v22 = vmov 1326507024  }
  0xa6   :  { %v106_v41 = vsel %vm105_vm7, %v104_v30, 0  ;;  %v1685_v55 = vshrl.u32 %v209_v2, 5  ;;  %v211_v56 = vand.u32 31, %v209_v2  ;;  %vm1722_vm3 = vcmp.le.f32.partialorder %v94_v14, 0.7853982 }
  0xa7   :  { %v108_v44 = vand.u32 31, %v106_v41  ;;  %v107_v48 = vshrl.u32 %v106_v41, 5  ;;  %1467 = vpow2.f32 %v1683_v54  ;;  %vm199_vm5 = vcmp.lt.s32.totalorder %v1606_v3, 0 }
  0xa8   :  { %v212_v30 = vsub.s32 32, %v211_v56  ;;  %vm229_vm14 = vcmp.lt.s32.totalorder %v1685_v55, 1  ;;  %vm230_vm15 = vcmp.lt.s32.totalorder %v1685_v55, 2  ;;  %vm231_vm0 = vcmp.lt.s32.totalorder %v1685_v55, 3 }
  0xa9   :  { %v109_v53 = vsub.s32 32, %v108_v44  ;;  %v111_v59 = vshll.u32 %v1543_v57, %v108_v44  ;;  %v114_v62 = vshll.u32 %v1544_v61, %v108_v44  ;;  %v117_v0 = vshll.u32 %v1545_v63, %v108_v44 }
  0xaa   :  { %v120_v13 = vshll.u32 %v1546_v1, %v108_v44  ;;  %v123_v19 = vshll.u32 %v1547_v18, %v108_v44  ;;  %vm126_vm9 = vcmp.lt.s32.totalorder %v107_v48, 1  ;;  %vm128_vm10 = vcmp.lt.s32.totalorder %v107_v48, 3 }
  0xab   :  { %v112_v15 = vshrl.u32 %v1544_v61, %v109_v53  ;;  %v115_v16 = vshrl.u32 %v1545_v63, %v109_v53  ;;  %v118_v17 = vshrl.u32 %v1546_v1, %v109_v53  ;;  %v110_v20 = vshrl.u32 %v1543_v57, %v109_v53 }
  0xac   :  { %v121_v21 = vshrl.u32 %v1547_v18, %v109_v53  ;;  %v124_v23 = vshrl.u32 %v1548_v22, %v109_v53  ;;  %vm129_vm11 = vcmp.lt.s32.totalorder %v107_v48, 4  ;;  %vm127_vm12 = vcmp.lt.s32.totalorder %v107_v48, 2 }
  0xad   :  { %v113_v24 = vor.u32 %v112_v15, %v111_v59  ;;  %v116_v25 = vor.u32 %v115_v16, %v114_v62  ;;  %v119_v26 = vor.u32 %v118_v17, %v117_v0  ;;  %v214_v53 = vshll.u32 %v1543_v57, %v211_v56 }
  0xae   :  { %v122_v27 = vor.u32 %v121_v21, %v120_v13  ;;  %v125_v28 = vor.u32 %v124_v23, %v123_v19  ;;  %v215_v36 = vshrl.u32 %v1544_v61, %v212_v30  ;;  %v213_v15 = vshrl.u32 %v1543_v57, %v212_v30 }
  0xaf   :  { %v130_v31 = vsel %vm126_vm9, %v110_v20, %v113_v24  ;;  %v131_v32 = vsel %vm129_vm11, %v119_v26, 2102212464  ;;  %v134_v34 = vsel %vm126_vm9, %v113_v24, %v116_v25  ;;  %v138_v38 = vsel %vm126_vm9, %v116_v25, %v119_v26 }
  0xb0   :  { %v132_v39 = vsel %vm128_vm10, %v116_v25, %v131_v32  ;;  %v135_v41 = vsel %vm129_vm11, %v122_v27, 920167782  ;;  %v139_v2 = vsel %vm129_vm11, %v125_v28, 1326507024  ;;  %v217_v48 = vshll.u32 %v1544_v61, %v211_v56 }
  0xb1   :  { %v136_v44 = vsel %vm128_vm10, %v119_v26, %v135_v41  ;;  %v140_v43 = vsel %vm128_vm10, %v122_v27, %v139_v2  ;;  %v133_v59 = vsel %vm127_vm12, %v130_v31, %v132_v39  ;;  %v218_v20 = vshrl.u32 %v1545_v63, %v212_v30 }
  0xb2   :  { %v137_v62 = vsel %vm127_vm12, %v134_v34, %v136_v44  ;;  %v141_v0 = vsel %vm127_vm12, %v138_v38, %v140_v43  ;;  %v220_v21 = vshll.u32 %v1545_v63, %v211_v56  ;;  %v221_v23 = vshrl.u32 %v1546_v1, %v212_v30 }
  0xb3   :  { %v1688_v13 = vmul.u32.u64.low %v1667_v45, %v141_v0  ;;  %v1689_v16 = vmul.u32.u64.high %v1667_v45, %v141_v0, %v1688_v13  ;;  %v1692_v17 = vmul.u32.u64.low %v1667_v45, %v137_v62  ;;  %v1693_v19 = vmul.u32.u64.high %v1667_v45, %v137_v62, %v1692_v17 }
  0xb4   :  { %v216_v24 = vor.u32 %v215_v36, %v214_v53  ;;  %v223_v25 = vshll.u32 %v1546_v1, %v211_v56  ;;  %v224_v26 = vshrl.u32 %v1547_v18, %v212_v30  ;;  %v227_v27 = vshrl.u32 %v1548_v22, %v212_v30 }
  0xb5   :  { %v149_v43 = vmul.u32 %v1667_v45, %v133_v59  ;;  %v219_v57 = vor.u32 %v218_v20, %v217_v48  ;;  %v222_v28 = vor.u32 %v221_v23, %v220_v21  ;;  %v226_v31 = vshll.u32 %v1547_v18, %v211_v56 }
  0xb6   :  { %vm151_vm13 = vc.u32 %v1689_v16, %v1692_v17  ;;  %v152_v32 = vadd.s32 1, %v1693_v19  ;;  %v225_v34 = vor.u32 %v224_v26, %v223_v25  ;;  %vm232_vm1 = vcmp.lt.s32.totalorder %v1685_v55, 4 }
  0xb7   :  { %v228_v61 = vor.u32 %v227_v27, %v226_v31  ;;  %v234_v45 = vsel %vm232_vm1, %v222_v28, 2102212464  ;;  %v237_v63 = vsel %vm229_vm14, %v216_v24, %v219_v57  ;;  %v233_v18 = vsel %vm229_vm14, %v213_v15, %v216_v24 }
  0xb8   :  { %v153_v36 = vsel %vm151_vm13, %v152_v32, %v1693_v19  ;;  %v238_v56 = vsel %vm232_vm1, %v225_v34, 920167782  ;;  %v241_v30 = vsel %vm229_vm14, %v219_v57, %v222_v28  ;;  %v235_v38 = vsel %vm231_vm0, %v219_v57, %v234_v45 }
  0xb9   :  { %v154_v1 = vadd.s32 %v153_v36, %v149_v43  ;;  %v239_v22 = vsel %vm231_vm0, %v222_v28, %v238_v56  ;;  %v242_v41 = vsel %vm232_vm1, %v228_v61, 1326507024  ;;  %v552_v2 = vmul.f32 %v1674_v49, %v1674_v49 }
  0xba   :  { %v240_v39 = vsel %vm230_vm15, %v237_v63, %v239_v22  ;;  %v243_v53 = vsel %vm231_vm0, %v225_v34, %v242_v41  ;;  %v602_v15 = vmul.f32 1.442695, %v1669_v46  ;;  %v553_v49 = vmul.f32 %v1677_v51, %v1677_v51 }
  0xbb   :  { %v155_v44 = vadd.s32 536870912, %v154_v1  ;;  %v1717_v59 = vmul.u32.u64.low %v1671_v47, %v240_v39  ;;  %v1718_v62 = vmul.u32.u64.high %v1671_v47, %v240_v39, %v1717_v59  ;;  %v244_v13 = vsel %vm230_vm15, %v241_v30, %v243_v53 }
  0xbc   :  { %v584_v19 = vmul.f32 -16.0, %v552_v2  ;;  %v236_v20 = vsel %vm230_vm15, %v233_v18, %v235_v38  ;;  %v1734_v21 = vmul.u32.u64.low %v1671_v47, %v244_v13  ;;  %v1735_v23 = vmul.u32.u64.high %v1671_v47, %v244_v13, %v1734_v21  ;;  %v1786_v13 = vpop.eup %1467 }
  0xbd   :  { %v156_v48 = vshrl.u32 %v155_v44, 30  ;;  %v585_v14 = vmul.f32 -16.0, %v553_v49  ;;  %v538_v24 = vmul.f32 %v1681_v52, %v1681_v52  ;;  %v1743_v46 = vrot.slane %v390_v42, %v1592_v50 }
  0xbe   :  { %v507_v51 = vsub.f32 %v1661_v40, %v1625_v11  ;;  %v255_v26 = vadd.s32 1, %v1718_v62  ;;  %v420_v27 = vcombine.high %v1643_v29, %v1643_v29  ;;  %v632_v43 = vmul.f32 1.442695, %v584_v19 }
  0xbf   :  { %v157_v25 = vshll.u32 %v156_v48, 30  ;;  %v180_v55 = vsub.s32 4, %v156_v48  ;;  %v463_v52 = vrot.slane %v1743_v46, %v1570_v4  ;;  %v252_v42 = vmul.u32 %v1671_v47, %v236_v20 }
  0xc0   :  { %v539_v57 = vmul.f32 %v507_v51, %v507_v51  ;;  %vm254_vm4 = vc.u32 %v1735_v23, %v1717_v59  ;;  %v634_v40 = vmul.f32 1.442695, %v585_v14  ;;  %1469 = vpow2.f32 %v602_v15 }
  0xc1   :  { %v1753_v5 = vsub.s32 %v154_v1, %v157_v25  ;;  %v181_v28 = vsel %vm96_vm2, %v180_v55, %v156_v48  ;;  %v256_v29 = vsel %vm254_vm4, %v255_v26, %v1718_v62  ;;  %v570_v31 = vmul.f32 -16.0, %v538_v24 }
  0xc2   :  { %v150_v54 = vadd.s32 %v1692_v17, %v1689_v16  ;;  %v257_v34 = vadd.s32 %v256_v29, %v252_v42  ;;  %v522_v47 = vsub.f32 %v463_v52, %v1615_v7  ;;  %vm1767_vm6 = vcmp.le.f32.partialorder %v197_v12, 0.7853982 }
  0xc3   :  { %v160_v32 = vsub.s32 0, %v1753_v5  ;;  %1471 = vpow2.f32 %v632_v43  ;;  %v571_v36 = vmul.f32 -16.0, %v539_v57  ;;  %v523_v45 = vsub.f32 %v463_v52, %v1625_v11 }
  0xc4   :  { %v435_v16 = vrot.slane %v371_v37, %v1570_v4  ;;  %v183_v63 = vsel %vm1722_vm3, 0, %v181_v28  ;;  %v1780_v56 = vadd.s32 %v1717_v59, %v1735_v23  ;;  %1473 = vpow2.f32 %v634_v40 }
  0xc5   :  { %v1313_v17 = vmin.u32 %v160_v32, %v1753_v5  ;;  %v258_v12 = vadd.s32 536870912, %v257_v34  ;;  %v604_v1 = vmul.f32 1.442695, %v570_v31  ;;  %v554_v18 = vmul.f32 %v522_v47, %v522_v47 }
  0xc6   :  { %v555_v22 = vmul.f32 %v523_v45, %v523_v45  ;;  %v508_v38 = vsub.f32 %v435_v16, %v1615_v7  ;;  %v467_v39 = vrot.slane %v420_v27, %v1570_v4  ;;  %v509_v10 = vsub.f32 %v435_v16, %v1625_v11 }
  0xc7   :  { %v162_v30 = vclz %v1313_v17  ;;  %v259_v37 = vshrl.u32 %v258_v12, 30  ;;  %v586_v41 = vmul.f32 -16.0, %v554_v18  ;;  %v606_v2 = vmul.f32 1.442695, %v571_v36 }
  0xc8   :  { %v587_v44 = vmul.f32 -16.0, %v555_v22  ;;  %v540_v62 = vmul.f32 %v508_v38, %v508_v38  ;;  %v524_v59 = vsub.f32 %v467_v39, %v1615_v7  ;;  %v541_v15 = vmul.f32 %v509_v10, %v509_v10 }
  0xc9   :  { %v1314_v53 = vadd.s32 4294967294, %v162_v30  ;;  %v260_v49 = vshll.u32 %v259_v37, 30  ;;  %v283_v19 = vsub.s32 4, %v259_v37  ;;  %1475 = vpow2.f32 %v604_v1 }
  0xca   :  { %v636_v48 = vmul.f32 1.442695, %v586_v41  ;;  %v572_v20 = vmul.f32 -16.0, %v540_v62  ;;  %v556_v21 = vmul.f32 %v524_v59, %v524_v59  ;;  %v573_v23 = vmul.f32 -16.0, %v541_v15  ;;  %v1788_v14 = vpop.eup %1469 }
  0xcb   :  { %vm1315_vm7 = vcmp.lt.s32.totalorder %v1314_v53, 0  ;;  %v1790_v51 = vsub.s32 %v257_v34, %v260_v49  ;;  %v284_v25 = vsel %vm199_vm5, %v283_v19, %v259_v37  ;;  %v638_v55 = vmul.f32 1.442695, %v587_v44 }
  0xcc   :  { %v165_v24 = vsel %vm1315_vm7, 0, %v1314_v53  ;;  %v286_v43 = vsel %vm1767_vm6, 0, %v284_v25  ;;  %1477 = vpow2.f32 %v606_v2  ;;  %v608_v40 = vmul.f32 1.442695, %v572_v20 }
  0xcd   :  { %v166_v26 = vsub.s32 32, %v165_v24  ;;  %v170_v27 = vsub.s32 4294967266, %v165_v24  ;;  %v1796_v52 = vpop.eup %1471  ;;  %v167_v57 = vshll.u32 %v1753_v5, %v165_v24  ;;  %v263_v42 = vsub.s32 0, %v1790_v51 }
  0xce   :  { %1479 = vpow2.f32 %v636_v48  ;;  %v1800_v28 = vpop.eup %1473  ;;  %v588_v32 = vmul.f32 -16.0, %v556_v21  ;;  %v610_v34 = vmul.f32 1.442695, %v573_v23  ;;  %v1802_v47 = vand.u32 3, %v183_v63 }
  0xcf   :  { %v168_v29 = vshrl.u32 %v150_v54, %v166_v26  ;;  %v171_v31 = vadd.s32 127, %v170_v27  ;;  %v1317_v36 = vmin.u32 %v263_v42, %v1790_v51  ;;  %v1805_v45 = vand.u32 3, %v286_v43 }
  0xd0   :  { %1481 = vpow2.f32 %v638_v55  ;;  %v640_v5 = vmul.f32 1.442695, %v588_v32  ;;  %v525_v1 = vsub.f32 %v467_v39, %v1625_v11  ;;  %v373_v54 = vcombine.high %v1646_v33, %v1646_v33 }
  0xd1   :  { %v169_v16 = vor.u32 %v168_v29, %v167_v57  ;;  %v172_v17 = vshll.u32 %v171_v31, 23  ;;  %1483 = vpow2.f32 %v608_v40  ;;  %v265_v12 = vclz %v1317_v36 }
  0xd2   :  { %1485 = vpow2.f32 %v610_v34  ;;  %v422_v63 = vcombine.high %v1743_v46, %v1743_v46  ;;  %v557_v10 = vmul.f32 %v525_v1, %v525_v1  ;;  %v439_v37 = vrot.slane %v373_v54, %v1570_v4 }
  0xd3   :  { %v173_v18 = vor.u32 4788187, %v172_v17  ;;  %v176_v22 = vcvt.s32.f32 %v169_v16  ;;  %1487 = vpow2.f32 %v640_v5  ;;  %v1812_v30 = vpop.eup %1475  ;;  %v1318_v38 = vadd.s32 4294967294, %v265_v12 }
  0xd4   :  { %v1817_v41 = vrot.slane %v1620_v9, %v1592_v50  ;;  %v471_v2 = vrot.slane %v422_v63, %v1570_v4  ;;  %v1822_v33 = vrot.slane %v1613_v6, %v1592_v50  ;;  %v2187_v46 = vcombine.high %v1620_v9, %v1620_v9 }
  0xd5   :  { %v174_v39 = vand.u32 2147483647, %v173_v18  ;;  %vm1319_vm8 = vcmp.lt.s32.totalorder %v1318_v38, 0  ;;  %v589_v53 = vmul.f32 -16.0, %v557_v10  ;;  %v510_v62 = vsub.f32 %v439_v37, %v1615_v7 }
  0xd6   :  { %v1828_v44 = vrot.slane %v2187_v46, %v1592_v50  ;;  %v511_v59 = vsub.f32 %v439_v37, %v1625_v11  ;;  %v1832_v15 = vpop.eup %1477  ;;  %v268_v19 = vsel %vm1319_vm8, 0, %v1318_v38  ;;  %v526_v48 = vsub.f32 %v471_v2, %v1615_v7 }
  0xd7   :  { %v177_v49 = vmul.f32 %v176_v22, %v174_v39  ;;  %v527_v20 = vsub.f32 %v471_v2, %v1625_v11  ;;  %v269_v23 = vsub.s32 32, %v268_v19  ;;  %v270_v9 = vshll.u32 %v1790_v51, %v268_v19 }
  0xd8   :  { %v1836_v21 = vpop.eup %1479  ;;  %v273_v24 = vsub.s32 4294967266, %v268_v19  ;;  %v642_v25 = vmul.f32 1.442695, %v589_v53  ;;  %v542_v26 = vmul.f32 %v510_v62, %v510_v62  ;;  %v558_v27 = vmul.f32 %v526_v48, %v526_v48 }
  0xd9   :  { %v178_v55 = vxor.u32 2147483648, %v177_v49  ;;  %v543_v43 = vmul.f32 %v511_v59, %v511_v59  ;;  %v271_v42 = vshrl.u32 %v1780_v56, %v269_v23  ;;  %v559_v29 = vmul.f32 %v527_v20, %v527_v20 }
  0xda   :  { %v1839_v57 = vpop.eup %1481  ;;  %v274_v40 = vadd.s32 127, %v273_v24  ;;  %1489 = vpow2.f32 %v642_v25  ;;  %v574_v34 = vmul.f32 -16.0, %v542_v26  ;;  %v590_v51 = vmul.f32 -16.0, %v558_v27 }
  0xdb   :  { %v1842_v31 = vpop.eup %1483  ;;  %v179_v32 = vsel %vm96_vm2, %v178_v55, %v177_v49  ;;  %v575_v36 = vmul.f32 -16.0, %v543_v43  ;;  %v272_v5 = vor.u32 %v271_v42, %v270_v9  ;;  %v591_v56 = vmul.f32 -16.0, %v559_v29 }
  0xdc   :  { %v1846_v16 = vpop.eup %1485  ;;  %v182_v17 = vsel %vm1722_vm3, %v1617_v8, %v179_v32  ;;  %v275_v12 = vshll.u32 %v274_v40, 23  ;;  %v612_v54 = vmul.f32 1.442695, %v574_v34  ;;  %v644_v18 = vmul.f32 1.442695, %v590_v51 }
  0xdd   :  { %v1851_v1 = vpop.eup %1487  ;;  %1491 = vcosq.f32 %v182_v17  ;;  %v614_v22 = vmul.f32 1.442695, %v575_v36  ;;  %v279_v38 = vcvt.s32.f32 %v272_v5  ;;  %v646_v10 = vmul.f32 1.442695, %v591_v56 }
  0xde   :  { %1493 = vsinq.f32 %v182_v17  ;;  %v276_v63 = vor.u32 4788187, %v275_v12  ;;  %v443_v37 = vrot.slane %v1817_v41, %v1570_v4  ;;  %v475_v0 = vrot.slane %v1822_v33, %v1570_v4 }
  0xdf   :  { %1495 = vpow2.f32 %v612_v54  ;;  %v447_v39 = vrot.slane %v1828_v44, %v1570_v4  ;;  %v2188_v46 = vcombine.high %v1613_v6, %v1613_v6  ;;  %v372_v62 = vcombine.high %v1817_v41, %v1817_v41 }
  0xe0   :  { %v277_v2 = vand.u32 2147483647, %v276_v63  ;;  %1497 = vpow2.f32 %v644_v18  ;;  %vm192_vm9 = vcmp.eq.s32.totalorder %v1802_v47, 2  ;;  %v512_v59 = vsub.f32 %v443_v37, %v1615_v7 }
  0xe1   :  { %v1863_v53 = vrot.slane %v2188_v46, %v1592_v50  ;;  %1499 = vpow2.f32 %v614_v22  ;;  %v528_v49 = vsub.f32 %v475_v0, %v1615_v7  ;;  %v513_v19 = vsub.f32 %v443_v37, %v1625_v11 }
  0xe2   :  { %vm189_vm10 = vcmp.eq.s32.totalorder %v1802_v47, 0  ;;  %v280_v48 = vmul.f32 %v279_v38, %v277_v2  ;;  %1501 = vpow2.f32 %v646_v10  ;;  %v529_v6 = vsub.f32 %v475_v0, %v1625_v11 }
  0xe3   :  { %v514_v20 = vsub.f32 %v447_v39, %v1615_v7  ;;  %vm188_vm11 = vcmp.lt.s32.totalorder %v1802_v47, 2  ;;  %v544_v41 = vmul.f32 %v512_v59, %v512_v59  ;;  %v560_v23 = vmul.f32 %v528_v49, %v528_v49 }
  0xe4   :  { %v545_v9 = vmul.f32 %v513_v19, %v513_v19  ;;  %v479_v24 = vrot.slane %v1863_v53, %v1570_v4  ;;  %v1877_v25 = vpop.eup %1489  ;;  %vm186_vm12 = vweird.f32 %v1617_v8  ;;  %v281_v55 = vxor.u32 2147483648, %v280_v48 }
  0xe5   :  { %v561_v26 = vmul.f32 %v529_v6, %v529_v6  ;;  %v546_v27 = vmul.f32 %v514_v20, %v514_v20  ;;  %v515_v43 = vsub.f32 %v447_v39, %v1625_v11  ;;  %v576_v42 = vmul.f32 -16.0, %v544_v41 }
  0xe6   :  { %v592_v40 = vmul.f32 -16.0, %v560_v23  ;;  %v577_v29 = vmul.f32 -16.0, %v545_v9  ;;  %v530_v32 = vsub.f32 %v479_v24, %v1615_v7  ;;  %v282_v34 = vsel %vm199_vm5, %v281_v55, %v280_v48 }
  0xe7   :  { %v593_v51 = vmul.f32 -16.0, %v561_v26  ;;  %v578_v36 = vmul.f32 -16.0, %v546_v27  ;;  %v547_v17 = vmul.f32 %v515_v43, %v515_v43  ;;  %v1492_v5 = vpop.eup %1491  ;;  %v285_v12 = vsel %vm1767_vm6, %v1606_v3, %v282_v34 }
  0xe8   :  { %v616_v56 = vmul.f32 1.442695, %v576_v42  ;;  %v648_v54 = vmul.f32 1.442695, %v592_v40  ;;  %v618_v18 = vmul.f32 1.442695, %v577_v29  ;;  %v1494_v22 = vpop.eup %1493  ;;  %1503 = vcosq.f32 %v285_v12 }
  0xe9   :  { %v193_v63 = vxor.u32 2147483648, %v1492_v5  ;;  %v650_v38 = vmul.f32 1.442695, %v593_v51  ;;  %v620_v10 = vmul.f32 1.442695, %v578_v36  ;;  %v1887_v37 = vpop.eup %1495  ;;  %v190_v0 = vxor.u32 2147483648, %v1494_v22 }
  0xea   :  { %vm87_vm13 = vcmp.lt.f32.partialorder %v1596_v60, 5.2  ;;  %1505 = vsinq.f32 %v285_v12  ;;  %v562_v39 = vmul.f32 %v530_v32, %v530_v32  ;;  %v579_v2 = vmul.f32 -16.0, %v547_v17  ;;  %v1890_v46 = vpop.eup %1497 }
  0xeb   :  { %v194_v61 = vsel %vm192_vm9, %v193_v63, %v1494_v22  ;;  %1507 = vpow2.f32 %v616_v56  ;;  %v531_v59 = vsub.f32 %v479_v24, %v1625_v11  ;;  %v451_v49 = vrot.slane %v372_v62, %v1570_v4  ;;  %v1896_v19 = vpop.eup %1499 }
  0xec   :  { %v191_v48 = vsel %vm189_vm10, %v1492_v5, %v190_v0  ;;  %1509 = vpow2.f32 %v648_v54  ;;  %v594_v6 = vmul.f32 -16.0, %v562_v39  ;;  %v622_v20 = vmul.f32 1.442695, %v579_v2  ;;  %v1900_v41 = vpop.eup %1501 }
  0xed   :  { %v195_v23 = vsel %vm188_vm11, %v191_v48, %v194_v61  ;;  %vm295_vm14 = vcmp.eq.s32.totalorder %v1805_v45, 2  ;;  %1511 = vpow2.f32 %v618_v18  ;;  %v563_v9 = vmul.f32 %v531_v59, %v531_v59 }
  0xee   :  { %v516_v24 = vsub.f32 %v451_v49, %v1615_v7  ;;  %v196_v62 = vsel %vm186_vm12, nan, %v195_v23  ;;  %vm292_vm15 = vcmp.eq.s32.totalorder %v1805_v45, 0  ;;  %1513 = vpow2.f32 %v650_v38 }
  0xef   :  { %v652_v55 = vmul.f32 1.442695, %v594_v6  ;;  %v421_v26 = vcombine.high %v1822_v33, %v1822_v33  ;;  %v300_v27 = vmul.f32 0.5, %v196_v62  ;;  %vm291_vm0 = vcmp.lt.s32.totalorder %v1805_v45, 2 }
  0xf0   :  { %1515 = vpow2.f32 %v620_v10  ;;  %v595_v47 = vmul.f32 -16.0, %v563_v9  ;;  %v548_v43 = vmul.f32 %v516_v24, %v516_v24  ;;  %vm289_vm1 = vweird.f32 %v1606_v3 }
  0xf1   :  { %1517 = vpow2.f32 %v652_v55  ;;  %v483_v42 = vrot.slane %v421_v26, %v1570_v4  ;;  %v517_v8 = vsub.f32 %v451_v49, %v1625_v11  ;;  %v374_v40 = vcombine.high %v1828_v44, %v1828_v44 }
  0xf2   :  { %v302_v29 = vadd.f32 0.5, %v300_v27  ;;  %1519 = vpow2.f32 %v622_v20  ;;  %v654_v32 = vmul.f32 1.442695, %v595_v47  ;;  %v580_v33 = vmul.f32 -16.0, %v548_v43  ;;  %v1504_v5 = vpop.eup %1503 }
  0xf3   :  { %v532_v34 = vsub.f32 %v483_v42, %v1615_v7  ;;  %v549_v51 = vmul.f32 %v517_v8, %v517_v8  ;;  %v533_v36 = vsub.f32 %v483_v42, %v1625_v11  ;;  %v455_v17 = vrot.slane %v374_v40, %v1570_v4 }
  0xf4   :  { %v304_v12 = vsel %vm87_vm13, %v302_v29, 0.0  ;;  %1521 = vpow2.f32 %v654_v32  ;;  %v624_v56 = vmul.f32 1.442695, %v580_v33  ;;  %v423_v44 = vcombine.high %v1863_v53, %v1863_v53  ;;  %v1506_v54 = vpop.eup %1505 }
  0xf5   :  { %v313_v18 = vmul.f32 0.25, %v304_v12  ;;  %v296_v22 = vxor.u32 2147483648, %v1504_v5  ;;  %v564_v63 = vmul.f32 %v532_v34, %v532_v34  ;;  %v581_v38 = vmul.f32 -16.0, %v549_v51  ;;  %v1924_v10 = vpop.eup %1507 }
  0xf6   :  { %vm888_vm2 = vcmask 64512   ;;  %vm88_vm3 = vcmp.lt.f32.partialorder %v1594_v58, 5.2  ;;  %v293_v0 = vxor.u32 2147483648, %v1506_v54  ;;  %1523 = vpow2.f32 %v624_v56  ;;  %v1928_v2 = vpop.eup %1509 }
  0xf7   :  { %v565_v39 = vmul.f32 %v533_v36, %v533_v36  ;;  %v518_v60 = vsub.f32 %v455_v17, %v1615_v7  ;;  %v315_v61 = vmul.f32 %v1651_v35, %v313_v18  ;;  %v297_v53 = vsel %vm295_vm14, %v296_v22, %v1506_v54  ;;  %v1512_v48 = vpop.eup %1511 }
  0xf8   :  { %v596_v59 = vmul.f32 -16.0, %v564_v63  ;;  %v626_v49 = vmul.f32 1.442695, %v581_v38  ;;  %v294_v6 = vsel %vm292_vm15, %v1504_v5, %v293_v0  ;;  %v1936_v9 = vrot.slane %v423_v44, %v1570_v4  ;;  %v1938_v24 = vpop.eup %1513 }
  0xf9   :  { %v597_v20 = vmul.f32 -16.0, %v565_v39  ;;  %v550_v23 = vmul.f32 %v518_v60, %v518_v60  ;;  %v666_v62 = vcombine.high %v315_v61, %v315_v61  ;;  %v673_v55 = vrot.slane %v315_v61, %v1592_v50 }
  0xfa   :  { %v298_v26 = vsel %vm291_vm0, %v294_v6, %v297_v53  ;;  %v656_v27 = vmul.f32 1.442695, %v596_v59  ;;  %v1516_v47 = vpop.eup %1515  ;;  %1525 = vpow2.f32 %v626_v49  ;;  %v534_v36 = vsub.f32 %v1936_v9, %v1615_v7 }
  0xfb   :  { %v299_v43 = vsel %vm289_vm1, nan, %v298_v26  ;;  %v658_v42 = vmul.f32 1.442695, %v597_v20  ;;  %v582_v8 = vmul.f32 -16.0, %v550_v23  ;;  %v1945_v40 = vpop.eup %1517  ;;  %v681_v29 = vcombine.high %v673_v55, %v673_v55 }
  0xfc   :  { %v689_v32 = vrot.slane %v673_v55, %v1592_v50  ;;  %v301_v33 = vmul.f32 0.5, %v299_v43  ;;  %v680_v34 = vrot.slane %v666_v62, %v1592_v50  ;;  %v1520_v51 = vpop.eup %1519  ;;  %1527 = vpow2.f32 %v656_v27 }
  0xfd   :  { %v628_v45 = vmul.f32 1.442695, %v582_v8  ;;  %v519_v3 = vsub.f32 %v455_v17, %v1625_v11  ;;  %v703_v44 = vrot.slane %v681_v29, %v1592_v50  ;;  %1529 = vpow2.f32 %v658_v42 }
  0xfe   :  { %v711_v5 = vcombine.high %v689_v32, %v689_v32  ;;  %v767_v12 = vrot.slane %v689_v32, %v1570_v4  ;;  %v303_v56 = vadd.f32 0.5, %v301_v33  ;;  %v1954_v54 = vpop.eup %1521  ;;  %v696_v18 = vrot.slane %v680_v34, %v1592_v50 }
  0xff   :  { %v682_v22 = vcombine.high %v680_v34, %v680_v34  ;;  %v566_v63 = vmul.f32 %v534_v36, %v534_v36  ;;  %v771_v17 = vrot.slane %v703_v44, %v1570_v4  ;;  %v713_v53 = vcombine.high %v703_v44, %v703_v44 }
 0x100   :  { %v844_v38 = vmul.f32 %v1786_v13, %v767_v12  ;;  %v845_v0 = vmul.f32 %v1788_v14, %v767_v12  ;;  %v305_v7 = vsel %vm88_vm3, %v303_v56, 0.0  ;;  %v1524_v39 = vpop.eup %1523  ;;  %v775_v61 = vrot.slane %v711_v5, %v1570_v4 }
 0x101   :  { %v314_v60 = vmul.f32 0.25, %v305_v7  ;;  %v783_v59 = vrot.slane %v696_v18, %v1570_v4  ;;  %v846_v49 = vmul.f32 %v1812_v30, %v771_v17  ;;  %v847_v13 = vmul.f32 %v1832_v15, %v771_v17 }
 0x102   :  { %1393 = vmatprep.mubr.msk.f32.mxu0 %vm888_vm2, %v844_v38  ;;  %v710_v14 = vrot.slane %v682_v22, %v1592_v50  ;;  %v712_v6 = vcombine.high %v696_v18, %v696_v18  ;;  %v848_v20 = vmul.f32 %v1842_v31, %v775_v61  ;;  %v849_v23 = vmul.f32 %v1846_v16, %v775_v61 }
 0x103   :  { %v316_v58 = vmul.f32 %v1651_v35, %v314_v60  ;;  %1394 = vmatmul.mubr.msk.f32.vlgmr.msra.gmra.mrb[0].mxu0 %vm888_vm2, %v845_v0  ;;  %v779_v62 = vrot.slane %v713_v53, %v1570_v4  ;;  %v852_v55 = vmul.f32 %v1924_v10, %v783_v59  ;;  %v1975_v30 = vmul.f32 %v1512_v48, %v783_v59 }
 0x104   :  { %1396 = vmatprep.mubr.msk.f32.mxu0 %vm888_vm2, %v846_v49  ;;  %v787_v15 = vrot.slane %v710_v14, %v1570_v4  ;;  %v791_v26 = vrot.slane %v712_v6, %v1570_v4  ;;  %v1526_v27 = vpop.eup %1525  ;;  %1531 = vpow2.f32 %v628_v45  ;;  %vm1275_vm4 = vcmask 31744  }
 0x105   :  { %v715_v35 = vcombine.high %v316_v58, %v316_v58  ;;  %v722_v43 = vrot.slane %v316_v58, %v1592_v50  ;;  %v850_v31 = vmul.f32 %v1887_v37, %v779_v62  ;;  %v851_v16 = vmul.f32 %v1896_v19, %v779_v62 }
 0x106   :  { %v1982_v42 = vmul.f32 %v1516_v47, %v787_v15  ;;  %v1984_v8 = vmul.f32 %v1520_v51, %v787_v15  ;;  %v1986_v29 = vmul.f32 %v1524_v39, %v791_v26  ;;  %v1988_v10 = vmul.f32 %v1526_v27, %v791_v26  ;;  %v1528_v48 = vpop.eup %1527 }
 0x107   :  { %v730_v32 = vcombine.high %v722_v43, %v722_v43  ;;  %v738_v33 = vrot.slane %v722_v43, %v1592_v50  ;;  %1397 = vmatmul.mubr.msk.f32.gmra.mrb[2].mxu0 %vm888_vm2, %v847_v13  ;;  %v729_v34 = vrot.slane %v715_v35, %v1592_v50  ;;  %v714_v37 = vcombine.high %v710_v14, %v710_v14  ;;  %v1530_v36 = vpop.eup %1529 }
 0x108   :  { %1399 = vmatprep.mubr.msk.f32.mxu0 %vm888_vm2, %v848_v20  ;;  %v598_v19 = vmul.f32 -16.0, %v566_v63  ;;  %v551_v47 = vmul.f32 %v519_v3, %v519_v3  ;;  %v535_v51 = vsub.f32 %v1936_v9, %v1625_v11 }
 0x109   :  { %v760_v5 = vcombine.high %v738_v33, %v738_v33  ;;  %v799_v12 = vrot.slane %v738_v33, %v1570_v4  ;;  %v752_v56 = vrot.slane %v730_v32, %v1592_v50  ;;  %v745_v44 = vrot.slane %v729_v34, %v1592_v50 }
 0x10a   :  { %v731_v18 = vcombine.high %v729_v34, %v729_v34  ;;  %v795_v22 = vrot.slane %v714_v37, %v1570_v4  ;;  %v660_v45 = vmul.f32 1.442695, %v598_v19  ;;  %v583_v38 = vmul.f32 -16.0, %v551_v47 }
 0x10b   :  { %v860_v0 = vmul.f32 %v1796_v52, %v799_v12  ;;  %v861_v3 = vmul.f32 %v1800_v28, %v799_v12  ;;  %v803_v63 = vrot.slane %v752_v56, %v1570_v4  ;;  %v807_v11 = vrot.slane %v760_v5, %v1570_v4  ;;  %1400 = vmatmul.mubr.msk.f32.gmra.mrb[4].mxu0 %vm888_vm2, %v849_v23 }
 0x10c   :  { %1402 = vmatprep.mubr.msk.f32.mxu0 %vm888_vm2, %v850_v31  ;;  %v762_v9 = vcombine.high %v752_v56, %v752_v56  ;;  %v815_v7 = vrot.slane %v745_v44, %v1570_v4  ;;  %v759_v17 = vrot.slane %v731_v18, %v1592_v50  ;;  %v761_v39 = vcombine.high %v745_v44, %v745_v44 }
 0x10d   :  { %1419 = vmatprep.mubr.msk.f32.mxu1 %vm888_vm2, %v860_v0  ;;  %v862_v52 = vmul.f32 %v1836_v21, %v803_v63  ;;  %v863_v28 = vmul.f32 %v1839_v57, %v803_v63  ;;  %v864_v60 = vmul.f32 %v1851_v1, %v807_v11  ;;  %v865_v61 = vmul.f32 %v1877_v25, %v807_v11 }
 0x10e   :  { %1420 = vmatmul.mubr.msk.f32.vlgmr.msra.gmra.mrb[0].mxu1 %vm888_vm2, %v861_v3  ;;  %v811_v53 = vrot.slane %v762_v9, %v1570_v4  ;;  %v868_v59 = vmul.f32 %v1928_v2, %v815_v7  ;;  %v869_v49 = vmul.f32 %v1938_v24, %v815_v7  ;;  %v819_v50 = vrot.slane %v759_v17, %v1570_v4  ;;  %v1532_v13 = vpop.eup %1531 }
 0x10f   :  { %1422 = vmatprep.mubr.msk.f32.mxu1 %vm888_vm2, %v862_v52  ;;  %1403 = vmatmul.mubr.msk.f32.gmra.mrb[6].mxu0 %vm888_vm2, %v851_v16  ;;  %v823_v21 = vrot.slane %v761_v39, %v1570_v4  ;;  %1533 = vpow2.f32 %v660_v45  ;;  %v630_v57 = vmul.f32 1.442695, %v583_v38  ;;  %v858_v58 = vmul.f32 %v1532_v13, %v795_v22 }
 0x110   :  { %v866_v1 = vmul.f32 %v1890_v46, %v811_v53  ;;  %v867_v25 = vmul.f32 %v1900_v41, %v811_v53  ;;  %1405 = vmatprep.mubr.msk.f32.mxu0 %vm888_vm2, %v852_v55  ;;  %v870_v2 = vmul.f32 %v1945_v40, %v819_v50  ;;  %v871_v24 = vmul.f32 %v1954_v54, %v819_v50 }
 0x111   :  { %v872_v14 = vmul.f32 %v1528_v48, %v823_v21  ;;  %v873_v6 = vmul.f32 %v1530_v36, %v823_v21  ;;  %1535 = vpow2.f32 %v630_v57  ;;  %v763_v20 = vcombine.high %v759_v17, %v759_v17 }
 0x112   :  { %1423 = vmatmul.mubr.msk.f32.gmra.mrb[2].mxu1 %vm888_vm2, %v863_v28  ;;  %v567_v23 = vmul.f32 %v535_v51, %v535_v51 }
 0x113   :  { %1425 = vmatprep.mubr.msk.f32.mxu1 %vm888_vm2, %v864_v60  ;;  %1406 = vmatmul.mubr.msk.f32.gmra.mrb[8].mxu0 %vm888_vm2, %v1975_v30  ;;  %v827_v41 = vrot.slane %v763_v20, %v1570_v4 }
 0x114   :  { %1408 = vmatprep.mubr.msk.f32.mxu0 %vm888_vm2, %v1982_v42  ;;  %v599_v46 = vmul.f32 -16.0, %v567_v23 }
 0x116   :  { %1426 = vmatmul.mubr.msk.f32.gmra.mrb[4].mxu1 %vm888_vm2, %v865_v61  ;;  %v662_v40 = vmul.f32 1.442695, %v599_v46 }
 0x117   :  { %1428 = vmatprep.mubr.msk.f32.mxu1 %vm888_vm2, %v866_v1  ;;  %1409 = vmatmul.mubr.msk.f32.gmra.mrb[10].mxu0 %vm888_vm2, %v1984_v8 }
 0x118   :  { %1411 = vmatprep.mubr.msk.f32.mxu0 %vm888_vm2, %v1986_v29  ;;  %1537 = vpow2.f32 %v662_v40 }
 0x119   :  { %v1534_v54 = vpop.eup %1533 }
 0x11a   :  { %1429 = vmatmul.mubr.msk.f32.gmra.mrb[6].mxu1 %vm888_vm2, %v867_v25  ;;  %v874_v62 = vmul.f32 %v1534_v54, %v827_v41 }
 0x11b   :  { %v1536_v55 = vpop.eup %1535  ;;  %1431 = vmatprep.mubr.msk.f32.mxu1 %vm888_vm2, %v868_v59  ;;  %1412 = vmatmul.mubr.msk.f32.gmra.mrb[12].mxu0 %vm888_vm2, %v1988_v10 }
 0x11c   :  { %1414 = vmatprep.mubr.msk.f32.mxu0 %vm888_vm2, %v858_v58  ;;  %v859_v4 = vmul.f32 %v1536_v55, %v795_v22 }
 0x11e   :  { %1432 = vmatmul.mubr.msk.f32.gmra.mrb[8].mxu1 %vm888_vm2, %v869_v49 }
 0x11f   :  { %1434 = vmatprep.mubr.msk.f32.mxu1 %vm888_vm2, %v870_v2  ;;  %1415 = vmatmul.mubr.msk.f32.gmra.mrb[14].mxu0 %vm888_vm2, %v859_v4 }
 0x122   :  { %v1538_v30 = vpop.eup %1537  ;;  %1435 = vmatmul.mubr.msk.f32.gmra.mrb[10].mxu1 %vm888_vm2, %v871_v24 }
 0x123   :  { %1437 = vmatprep.mubr.msk.f32.mxu1 %vm888_vm2, %v872_v14  ;;  %v875_v15 = vmul.f32 %v1538_v30, %v827_v41 }
 0x126   :  { %1438 = vmatmul.mubr.msk.f32.gmra.mrb[12].mxu1 %vm888_vm2, %v873_v6 }
 0x127   :  { %1440 = vmatprep.mubr.msk.f32.mxu1 %vm888_vm2, %v874_v62 }
 0x12a   :  { %1441 = vmatmul.mubr.msk.f32.gmra.mrb[14].mxu1 %vm888_vm2, %v875_v15 }
 0x1d6   :  { %v1395_v26 = vpop.f32.mrb[0].mxu0 }
 0x1d7   :  { %1277 = vst.msk [vmem:[%s2182_s2 + $0x8] sm:$0xff] %vm1275_vm4, %v1395_v26  ;;  %v1003_v27 = vpop.f32.mrb[1].mxu0 }
 0x1d8   :  { %1276 = vst.msk [vmem:[%s2182_s2] sm:$0xff] %vm1275_vm4, %v1003_v27 }
 0x1da   :  { %v1398_v35 = vpop.f32.mrb[2].mxu0 }
 0x1db   :  { %1279 = vst.msk [vmem:[%s2182_s2 + $0x18] sm:$0xff] %vm1275_vm4, %v1398_v35  ;;  %v1013_v43 = vpop.f32.mrb[3].mxu0 }
 0x1dc   :  { %1278 = vst.msk [vmem:[%s2182_s2 + $0x10] sm:$0xff] %vm1275_vm4, %v1013_v43 }
 0x1de   :  { %v1401_v31 = vpop.f32.mrb[4].mxu0 }
 0x1df   :  { %1281 = vst.msk [vmem:[%s2182_s2 + $0x28] sm:$0xff] %vm1275_vm4, %v1401_v31  ;;  %v1023_v16 = vpop.f32.mrb[5].mxu0 }
 0x1e0   :  { %1280 = vst.msk [vmem:[%s2182_s2 + $0x20] sm:$0xff] %vm1275_vm4, %v1023_v16 }
 0x1e1   :  { %v1421_v42 = vpop.f32.mrb[0].mxu1 }
 0x1e2   :  { %1293 = vst.msk [vmem:[%s2182_s2 + $0x88] sm:$0xff] %vm1275_vm4, %v1421_v42  ;;  %v1196_v8 = vpop.f32.mrb[1].mxu1  ;;  %v1404_v29 = vpop.f32.mrb[6].mxu0 }
 0x1e3   :  { %1292 = vst.msk [vmem:[%s2182_s2 + $0x80] sm:$0xff] %vm1275_vm4, %v1196_v8  ;;  %1283 = vst.msk [vmem:[%s2182_s2 + $0x38] sm:$0xff] %vm1275_vm4, %v1404_v29  ;;  %v1033_v10 = vpop.f32.mrb[7].mxu0 }
 0x1e4   :  { %1282 = vst.msk [vmem:[%s2182_s2 + $0x30] sm:$0xff] %vm1275_vm4, %v1033_v10 }
 0x1e5   :  { %v1424_v48 = vpop.f32.mrb[2].mxu1 }
 0x1e6   :  { %1295 = vst.msk [vmem:[%s2182_s2 + $0x98] sm:$0xff] %vm1275_vm4, %v1424_v48  ;;  %v1206_v32 = vpop.f32.mrb[3].mxu1  ;;  %v1407_v33 = vpop.f32.mrb[8].mxu0 }
 0x1e7   :  { %1294 = vst.msk [vmem:[%s2182_s2 + $0x90] sm:$0xff] %vm1275_vm4, %v1206_v32  ;;  %1285 = vst.msk [vmem:[%s2182_s2 + $0x48] sm:$0xff] %vm1275_vm4, %v1407_v33  ;;  %v1043_v34 = vpop.f32.mrb[9].mxu0 }
 0x1e8   :  { %1284 = vst.msk [vmem:[%s2182_s2 + $0x40] sm:$0xff] %vm1275_vm4, %v1043_v34 }
 0x1e9   :  { %v1427_v37 = vpop.f32.mrb[4].mxu1 }
 0x1ea   :  { %1297 = vst.msk [vmem:[%s2182_s2 + $0xa8] sm:$0xff] %vm1275_vm4, %v1427_v37  ;;  %v1216_v19 = vpop.f32.mrb[5].mxu1  ;;  %v1410_v47 = vpop.f32.mrb[10].mxu0 }
 0x1eb   :  { %1296 = vst.msk [vmem:[%s2182_s2 + $0xa0] sm:$0xff] %vm1275_vm4, %v1216_v19  ;;  %1287 = vst.msk [vmem:[%s2182_s2 + $0x58] sm:$0xff] %vm1275_vm4, %v1410_v47  ;;  %v1053_v51 = vpop.f32.mrb[11].mxu0 }
 0x1ec   :  { %1286 = vst.msk [vmem:[%s2182_s2 + $0x50] sm:$0xff] %vm1275_vm4, %v1053_v51 }
 0x1ed   :  { %v1430_v36 = vpop.f32.mrb[6].mxu1 }
 0x1ee   :  { %1299 = vst.msk [vmem:[%s2182_s2 + $0xb8] sm:$0xff] %vm1275_vm4, %v1430_v36  ;;  %v1226_v5 = vpop.f32.mrb[7].mxu1  ;;  %v1413_v12 = vpop.f32.mrb[12].mxu0 }
 0x1ef   :  { %1298 = vst.msk [vmem:[%s2182_s2 + $0xb0] sm:$0xff] %vm1275_vm4, %v1226_v5  ;;  %1289 = vst.msk [vmem:[%s2182_s2 + $0x68] sm:$0xff] %vm1275_vm4, %v1413_v12  ;;  %v1063_v56 = vpop.f32.mrb[13].mxu0 }
 0x1f0   :  { %1288 = vst.msk [vmem:[%s2182_s2 + $0x60] sm:$0xff] %vm1275_vm4, %v1063_v56 }
 0x1f1   :  { %v1433_v44 = vpop.f32.mrb[8].mxu1 }
 0x1f2   :  { %1301 = vst.msk [vmem:[%s2182_s2 + $0xc8] sm:$0xff] %vm1275_vm4, %v1433_v44  ;;  %v1236_v18 = vpop.f32.mrb[9].mxu1  ;;  %v1416_v22 = vpop.f32.mrb[14].mxu0 }
 0x1f3   :  { %1300 = vst.msk [vmem:[%s2182_s2 + $0xc0] sm:$0xff] %vm1275_vm4, %v1236_v18  ;;  %1291 = vst.msk [vmem:[%s2182_s2 + $0x78] sm:$0xff] %vm1275_vm4, %v1416_v22  ;;  %v1073_v45 = vpop.f32.mrb[15].mxu0 }
 0x1f4   :  { %1290 = vst.msk [vmem:[%s2182_s2 + $0x70] sm:$0xff] %vm1275_vm4, %v1073_v45 }
 0x1f5   :  { %v1436_v38 = vpop.f32.mrb[10].mxu1 }
 0x1f6   :  { %1303 = vst.msk [vmem:[%s2182_s2 + $0xd8] sm:$0xff] %vm1275_vm4, %v1436_v38  ;;  %v1246_v0 = vpop.f32.mrb[11].mxu1 }
 0x1f7   :  { %1302 = vst.msk [vmem:[%s2182_s2 + $0xd0] sm:$0xff] %vm1275_vm4, %v1246_v0 }
 0x1f9   :  { %v1439_v3 = vpop.f32.mrb[12].mxu1 }
 0x1fa   :  { %1305 = vst.msk [vmem:[%s2182_s2 + $0xe8] sm:$0xff] %vm1275_vm4, %v1439_v3  ;;  %v1256_v63 = vpop.f32.mrb[13].mxu1 }
 0x1fb   :  { %1304 = vst.msk [vmem:[%s2182_s2 + $0xe0] sm:$0xff] %vm1275_vm4, %v1256_v63 }
 0x1fd   :  { %v1442_v11 = vpop.f32.mrb[14].mxu1 }
 0x1fe   :  { %1307 = vst.msk [vmem:[%s2182_s2 + $0xf8] sm:$0xff] %vm1275_vm4, %v1442_v11  ;;  %v1266_v9 = vpop.f32.mrb[15].mxu1 }
 0x1ff   :  { %1306 = vst.msk [vmem:[%s2182_s2 + $0xf0] sm:$0xff] %vm1275_vm4, %v1266_v9 }

</bundles_post_ra>
